<compile_context>
chip_gen: v7x
topology: tpu7x:2x2x1
jax: 0.10.0
libtpu: 0.0.40
codegen_flags: <defaults>
</compile_context>

<pallas_src>
import jax
import jax.numpy as jnp
from jax.experimental import pallas as pl
from jax.experimental.pallas import tpu as pltpu


def word_embedding_gather_kernel(ids_ref, table_ref, out_ref, buf, sem):
    # ids_ref   : (Np,)      int32   SMEM (scalar-prefetched token ids, full array)
    # table_ref : (V, D2p)   float32 HBM  (memory_space=pl.ANY): concat([W, W_c], 1), lane-padded
    # out_ref   : (TN, D2p)  float32 VMEM output tile
    # buf       : (TN, D2p)  float32 VMEM staging buffer for the gathered rows
    # sem       : DMA semaphore shared by all row copies of this tile
    tile = pl.program_id(0)
    tn = buf.shape[0]
    base = tile * tn

    # Issue one row DMA per token in this tile (all overlapped, shared semaphore).
    def start_row(t, carry):
        tok = ids_ref[base + t]
        pltpu.make_async_copy(
            table_ref.at[pl.ds(tok, 1), :],
            buf.at[pl.ds(t, 1), :],
            sem,
        ).start()
        return carry

    jax.lax.fori_loop(0, tn, start_row, 0)

    # Wait for all row copies (each wait decrements the shared sem by one row's bytes).
    def wait_row(t, carry):
        pltpu.make_async_copy(
            table_ref.at[pl.ds(0, 1), :],
            buf.at[pl.ds(t, 1), :],
            sem,
        ).wait()
        return carry

    jax.lax.fori_loop(0, tn, wait_row, 0)

    # Lane-dense, unmasked store of the whole (TN, D2p) tile.
    out_ref[...] = buf[...]


def word_embedding_forward(x, w, w_c, *, tile_tokens=128):
    """x: (B, S) integer token ids; w, w_c: (ntoken+1, emb_dim) float32.

    Returns concat([emb(x), emb_(x)], axis=-1) with shape (B, S, 2*emb_dim), float32.
    Dropout is identity (eval/inference semantics).
    """
    B, S = x.shape
    V, D = w.shape
    D2 = 2 * D

    # Pre-concatenate the two tables -> one row DMA per token, output already in
    # its final layout.  Pad the lane dim up to a multiple of 128 (lane-dense DMA/stores).
    table = jnp.concatenate([w.astype(jnp.float32), w_c.astype(jnp.float32)], axis=1)
    D2p = ((D2 + 127) // 128) * 128
    if D2p != D2:
        table = jnp.pad(table, ((0, 0), (0, D2p - D2)))

    N = B * S
    n_tiles = pl.cdiv(N, tile_tokens)
    Np = n_tiles * tile_tokens

    # Clamp ids so the row DMA is always in bounds (PyTorch would raise on OOB ids;
    # valid inputs are unaffected), and pad the token stream with the padding_idx
    # token (zero row V-1); padded rows are sliced off below.
    ids = jnp.clip(x.reshape(N).astype(jnp.int32), 0, V - 1)
    if Np != N:
        ids = jnp.pad(ids, (0, Np - N), constant_values=V - 1)

    out = pl.pallas_call(
        word_embedding_gather_kernel,
        out_shape=jax.ShapeDtypeStruct((Np, D2p), jnp.float32),
        grid_spec=pltpu.PrefetchScalarGridSpec(
            num_scalar_prefetch=1,                           # ids -> SMEM
            grid=(n_tiles,),
            in_specs=[pl.BlockSpec(memory_space=pl.ANY)],    # table stays in HBM
            out_specs=pl.BlockSpec((tile_tokens, D2p), lambda i, ids: (i, 0)),
            scratch_shapes=[
                pltpu.VMEM((tile_tokens, D2p), jnp.float32),  # gather staging buffer
                pltpu.SemaphoreType.DMA,                      # shared DMA completion sem
            ],
        ),
        compiler_params=pltpu.CompilerParams(
            dimension_semantics=("parallel",),  # token tiles are independent (megacore)
        ),
    )(ids, table)

    # Strip token and lane padding; dropout is identity in eval mode.
    return out[:N, :D2].reshape(B, S, D2)


if __name__ == "__main__":
    # Small, deterministic setup consistent with WordEmbedding(ntoken, emb_dim, dropout, op='c')
    ntoken, emb_dim = 48, 32
    B, S = 2, 8
    V = ntoken + 1  # extra row is padding_idx == ntoken

    key = jax.random.PRNGKey(0)
    k_w, k_wc, k_x = jax.random.split(key, 3)

    # nn.Embedding default init ~ N(0,1); padding_idx row is zeroed.
    w = jax.random.normal(k_w, (V, emb_dim), dtype=jnp.float32)
    w = w.at[ntoken].set(0.0)
    w_c = jax.random.normal(k_wc, (V, emb_dim), dtype=jnp.float32)
    w_c = w_c.at[ntoken].set(0.0)

    # Token ids in [0, ntoken]; force one padding token to exercise padding_idx.
    x = jax.random.randint(k_x, (B, S), 0, ntoken, dtype=jnp.int32)
    x = x.at[0, 3].set(ntoken)

    out = jax.block_until_ready(word_embedding_forward(x, w, w_c))

    # Pure-JAX reference: gather + concat (dropout is identity in eval).
    ref = jnp.concatenate([jnp.take(w, x, axis=0), jnp.take(w_c, x, axis=0)], axis=-1)
    assert out.shape == (B, S, 2 * emb_dim)
    assert jnp.allclose(out, ref, atol=1e-6), "mismatch vs reference gather"

    print("KERNEL_OK")
</pallas_src>

<mosaic_0001>
module attributes {stable_mosaic.version = 11 : i64} {
  func.func @word_embedding_gather_kernel(%arg0: i32, %arg1: memref<128xi32, #tpu.memory_space<smem>>, %arg2: memref<49x128xf32, #tpu.memory_space<any>>, %arg3: memref<128x128xf32, #tpu.memory_space<vmem>>, %arg4: memref<128x128xf32, #tpu.memory_space<vmem>>, %arg5: memref<!tpu.dma_semaphore, #tpu.memory_space<semaphore_mem>>) attributes {dimension_semantics = [#tpu.dimension_semantics<parallel>], iteration_bounds = array<i64: 1>, scalar_prefetch = 1 : i64, scratch_operands = 2 : i64, tpu.core_type = #tpu.core_type<tc>, window_params = [{}, {transform_indices = @transform_1, window_bounds = array<i64: 128, 128>}]} {
    %c128_i32 = arith.constant 128 : i32
    %0 = arith.muli %arg0, %c128_i32 : i32
    %c0_i32 = arith.constant 0 : i32
    %c128_i32_0 = arith.constant 128 : i32
    %1 = arith.addi %c0_i32, %c128_i32_0 : i32
    %c1_i32 = arith.constant 1 : i32
    scf.for %arg6 = %c0_i32 to %1 step %c1_i32  : i32 {
      %5 = arith.addi %0, %arg6 : i32
      %6 = arith.index_cast %5 : i32 to index
      %7 = memref.load %arg1[%6] : memref<128xi32, #tpu.memory_space<smem>>
      %c0_i32_9 = arith.constant 0 : i32
      %8 = tpu.memref_slice %arg2[%7, %c0_i32_9] : memref<49x128xf32, #tpu.memory_space<any>> -> memref<1x128xf32, #tpu.memory_space<any>>
      %c0_i32_10 = arith.constant 0 : i32
      %9 = tpu.memref_slice %arg4[%arg6, %c0_i32_10] : memref<128x128xf32, #tpu.memory_space<vmem>> -> memref<1x128xf32, #tpu.memory_space<vmem>>
      tpu.enqueue_dma source(%8 : memref<1x128xf32, #tpu.memory_space<any>>) target(%9 : memref<1x128xf32, #tpu.memory_space<vmem>>) target_semaphore(%arg5 : memref<!tpu.dma_semaphore, #tpu.memory_space<semaphore_mem>>)
    }
    %c128_i32_1 = arith.constant 128 : i32
    %c0_i32_2 = arith.constant 0 : i32
    %c128_i32_3 = arith.constant 128 : i32
    %2 = arith.addi %c0_i32_2, %c128_i32_3 : i32
    %c1_i32_4 = arith.constant 1 : i32
    scf.for %arg6 = %c0_i32_2 to %2 step %c1_i32_4  : i32 {
      %c0_i32_9 = arith.constant 0 : i32
      %c0_i32_10 = arith.constant 0 : i32
      %5 = tpu.memref_slice %arg2[%c0_i32_9, %c0_i32_10] : memref<49x128xf32, #tpu.memory_space<any>> -> memref<1x128xf32, #tpu.memory_space<any>>
      %c0_i32_11 = arith.constant 0 : i32
      %6 = tpu.memref_slice %arg4[%arg6, %c0_i32_11] : memref<128x128xf32, #tpu.memory_space<vmem>> -> memref<1x128xf32, #tpu.memory_space<vmem>>
      tpu.wait_dma2 semaphore(%arg5 : memref<!tpu.dma_semaphore, #tpu.memory_space<semaphore_mem>>) src(%5 : memref<1x128xf32, #tpu.memory_space<any>>) dst(%6 : memref<1x128xf32, #tpu.memory_space<vmem>>)
    }
    %c128_i32_5 = arith.constant 128 : i32
    %c0 = arith.constant 0 : index
    %c0_6 = arith.constant 0 : index
    %3 = vector.load %arg4[%c0, %c0_6] : memref<128x128xf32, #tpu.memory_space<vmem>>, vector<128x128xf32>
    %c0_7 = arith.constant 0 : index
    %c0_8 = arith.constant 0 : index
    %4 = vector.load %arg3[%c0_7, %c0_8] : memref<128x128xf32, #tpu.memory_space<vmem>>, vector<128x128xf32>
    tpu.vector_store %arg3[%c0_7, %c0_8], %3 {strides = array<i32>} : memref<128x128xf32, #tpu.memory_space<vmem>>, vector<128x128xf32>,
    return
  }
  func.func @transform_1(%arg0: i32, %arg1: memref<128xi32, #tpu.memory_space<smem>>) -> (i32, i32) {
    %c0_i32 = arith.constant 0 : i32
    %c0_i32_0 = arith.constant 0 : i32
    return %arg0, %c0_i32 : i32, i32
  }
}

</mosaic_0001>

<bundles_post_ra>
// kernel: tpu_custom_call.1
= control target key start
LH: loop header
LB: loop body
LE: loop exit
PB: predicated region body
PF: predicated region fallthrough
CT: control target
= control target key end

     0   :  { %s274_s0 = inlined_call_operand.hbm [shape: s32[128], index: 0, kind: input, shape index: {}]   ;;  %s275_s1 = inlined_call_operand.hbm [shape: f32[49,128], index: 1, kind: input, shape index: {}]   ;;  %s276_s2 = inlined_call_operand.hbm [shape: f32[128,128], index: 2, kind: output, shape index: {}]  }
   0x1   :  { %s133_s11 = scalar_lea.hbm %s274_s0, 16 }
   0x2   :  { %p134_p0 = scmp.ne.s32.totalorder %s274_s0, %s133_s11  ;;  %p137_p1 = scmp.lt.u32.totalorder %s133_s11, %s274_s0 }
   0x4   :  { %p139_p2 = pnand %p137_p1, %p134_p0 }
   0x6   :  { %142 = shalt.err (!%p139_p2)  }
   0x7   :  { %s211_s16 = smov [#allocation5]  }
   0x8   :  { %8 = dma.hbm_to_smem %s274_s0, 16, %s211_s16, [#allocation4] }
   0x9   :  { %197 = dma.done.wait [#allocation4], 16 }
   0xa   :  { %198 = vsyncadd [#allocation4], 4294967280 }
   0xb   :  { %10 = sfence }
   0xc   :  { %11 = vsyncpa [#allocation7], 0  ;;  %s243_s19 = smov 0  }
   0xd LB: > { %s20_s20 = sld [smem:[#allocation5 + %s205_s19]]  ;;  %s23_s21 = scalar_lea.vmem [#allocation2], %s205_s19  ;;  %s205_s19 = sphi %s243_s19, %s18_s19  }
   0xe   : > { %s31_s22 = sshll.u32 %s23_s21, 4  ;;  %s145_s29 = scalar_lea.hbm %s275_s1, 896  ;;  %s32_s22 = int_to_ptr.vmem [resolvable:$true] %s31_s22 }
  0x13   : > { %s111_s23 = sshll.u32 %s20_s20, 4 }
  0x14   : > { %s22_s25 = scalar_lea.hbm %s275_s1, %s111_s23 }
  0x15   : > { %s143_s26 = scalar_lea.hbm %s22_s25, 16  ;;  %p146_p4 = scmp.lt.u32.totalorder %s22_s25, %s275_s1 }
  0x16   : > { %p144_p3 = scmp.ne.s32.totalorder %s22_s25, %s143_s26  ;;  %p147_p5 = scmp.lt.u32.totalorder %s145_s29, %s143_s26 }
  0x17   : > { %p149_p7 = scmp.lt.u32.totalorder %s143_s26, %s22_s25 }
  0x18   : > { %p148_p6 = por %p147_p5, %p146_p4 }
  0x1a   : > { %p150_p8 = por %p149_p7, %p148_p6 }
  0x1c   : > { %p151_p9 = pnand %p150_p8, %p144_p3 }
  0x1e   : > { %154 = shalt.err (!%p151_p9)  }
  0x1f   : > { %s155_s4 = scalar_lea.vmem %s32_s22, 16  ;;  %s212_s5 = smov [#allocation2]  }
  0x20   : > { %p156_p10 = scmp.ne.s32.totalorder %s32_s22, %s155_s4  ;;  %s157_s6 = sshll.u32 %s212_s5, 4  ;;  %s158_s6 = int_to_ptr.vmem [resolvable:$false] %s157_s6 }
  0x21   : > { %s159_s7 = scalar_lea.vmem %s158_s6, 2048  ;;  %p160_p11 = scmp.lt.s32.totalorder %s32_s22, %s158_s6 }
  0x22   : > { %p161_p12 = scmp.lt.s32.totalorder %s159_s7, %s155_s4 }
  0x24   : > { %p162_p13 = por %p161_p12, %p160_p11 }
  0x26   : > { %p163_p0 = pnand %p162_p13, %p156_p10 }
  0x28   : > { %166 = shalt.err (!%p163_p0)  }
  0x29   : > { %34 = dma.hbm_to_vmem [thread:$0]  %s22_s25, 16, %s32_s22, [#allocation3] }
  0x2a   : > { %s18_s19 = sadd.s32 1, %s205_s19  }
  0x2b   : > { %p15_p1 = scmp.ge.s32.totalorder %s18_s19, 128  }
  0x2c   :  { %s207_s8 = smov (%p15_p1), 0  }
  0x2d   :  { %17 = sbr.rel (!%p15_p1) target bundleno = 13 (0xd), region = 40 }
  0x34 LB: > { %199 = dma.done.wait [#allocation3], 16  ;;  %s209_s8 = sphi %s207_s8, %s40_s8  }
  0x35   : > { %200 = vsyncadd [#allocation3], 4294967280  ;;  %s40_s8 = sadd.s32 1, %s209_s8  }
  0x36   : > { %p37_p2 = scmp.ge.s32.totalorder %s40_s8, 128  }
  0x37   :  { %v44_v0 = vld [vmem:[#allocation2] sm:$0xff] (%p37_p2)  ;;  %v45_v1 = vld [vmem:[#allocation2 + $0x8] sm:$0xff] (%p37_p2)  ;;  %v46_v2 = vld [vmem:[#allocation2 + $0x10] sm:$0xff] (%p37_p2)  ;;  %s213_s9 = smov (%p37_p2), [#allocation6]  }
  0x38   :  { %39 = sbr.rel (!%p37_p2) target bundleno = 52 (0x34), region = 51  ;;  %60 = vst [vmem:[#allocation6] sm:$0xff] (%p37_p2), %v44_v0  ;;  %61 = vst [vmem:[#allocation6 + $0x8] sm:$0xff] (%p37_p2), %v45_v1  ;;  %v47_v3 = vld [vmem:[#allocation2 + $0x18] sm:$0xff] (%p37_p2)  ;;  %v48_v4 = vld [vmem:[#allocation2 + $0x20] sm:$0xff] (%p37_p2)  ;;  %s81_s1 = sshll.u32 (%p37_p2), %s213_s9, 4  ;;  %s82_s1 = int_to_ptr.vmem [resolvable:$true] %s81_s1 }
  0x39   :  { %62 = vst [vmem:[#allocation6 + $0x10] sm:$0xff] (%p37_p2), %v46_v2  ;;  %v49_v5 = vld [vmem:[#allocation2 + $0x28] sm:$0xff] (%p37_p2)  ;;  %63 = vst [vmem:[#allocation6 + $0x18] sm:$0xff] (%p37_p2), %v47_v3  ;;  %v50_v6 = vld [vmem:[#allocation2 + $0x30] sm:$0xff] (%p37_p2)  ;;  %s167_s10 = scalar_lea.vmem (%p37_p2), %s82_s1, 2048  ;;  %p172_p4 = scmp.lt.s32.totalorder (%p37_p2), %s82_s1, %s82_s1 }
  0x3a   :  { %64 = vst [vmem:[#allocation6 + $0x20] sm:$0xff] (%p37_p2), %v48_v4  ;;  %65 = vst [vmem:[#allocation6 + $0x28] sm:$0xff] (%p37_p2), %v49_v5  ;;  %v51_v7 = vld [vmem:[#allocation2 + $0x38] sm:$0xff] (%p37_p2)  ;;  %v52_v8 = vld [vmem:[#allocation2 + $0x40] sm:$0xff] (%p37_p2)  ;;  %p168_p3 = scmp.ne.s32.totalorder (%p37_p2), %s82_s1, %s167_s10  ;;  %p173_p5 = scmp.lt.s32.totalorder (%p37_p2), %s167_s10, %s167_s10 }
  0x3b   :  { %66 = vst [vmem:[#allocation6 + $0x30] sm:$0xff] (%p37_p2), %v50_v6  ;;  %67 = vst [vmem:[#allocation6 + $0x38] sm:$0xff] (%p37_p2), %v51_v7  ;;  %v53_v9 = vld [vmem:[#allocation2 + $0x48] sm:$0xff] (%p37_p2)  ;;  %v54_v10 = vld [vmem:[#allocation2 + $0x50] sm:$0xff] (%p37_p2) }
  0x3c   :  { %68 = vst [vmem:[#allocation6 + $0x40] sm:$0xff] (%p37_p2), %v52_v8  ;;  %v55_v11 = vld [vmem:[#allocation2 + $0x58] sm:$0xff] (%p37_p2)  ;;  %69 = vst [vmem:[#allocation6 + $0x48] sm:$0xff] (%p37_p2), %v53_v9  ;;  %v56_v12 = vld [vmem:[#allocation2 + $0x60] sm:$0xff] (%p37_p2)  ;;  %p174_p6 = por (%p37_p2), %p173_p5, %p172_p4 }
  0x3d   :  { %70 = vst [vmem:[#allocation6 + $0x50] sm:$0xff] (%p37_p2), %v54_v10  ;;  %71 = vst [vmem:[#allocation6 + $0x58] sm:$0xff] (%p37_p2), %v55_v11  ;;  %v57_v13 = vld [vmem:[#allocation2 + $0x68] sm:$0xff] (%p37_p2)  ;;  %v58_v14 = vld [vmem:[#allocation2 + $0x70] sm:$0xff] (%p37_p2) }
  0x3e   :  { %72 = vst [vmem:[#allocation6 + $0x60] sm:$0xff] (%p37_p2), %v56_v12  ;;  %73 = vst [vmem:[#allocation6 + $0x68] sm:$0xff] (%p37_p2), %v57_v13  ;;  %v59_v15 = vld [vmem:[#allocation2 + $0x78] sm:$0xff] (%p37_p2)  ;;  %p175_p7 = pnand (%p37_p2), %p174_p6, %p168_p3 }
  0x3f   :  { %74 = vst [vmem:[#allocation6 + $0x70] sm:$0xff] %v58_v14  ;;  %75 = vst [vmem:[#allocation6 + $0x78] sm:$0xff] %v59_v15 }
  0x40   :  { %178 = shalt.err (!%p175_p7)
}
  0x41   :  { %s179_s13 = scalar_lea.hbm %s276_s2, 2048 }
  0x42   :  { %p180_p8 = scmp.ne.s32.totalorder %s276_s2, %s179_s13  ;;  %p183_p9 = scmp.lt.u32.totalorder %s179_s13, %s276_s2 }
  0x44   :  { %p185_p10 = pnand %p183_p9, %p180_p8 }
  0x46   :  { %188 = shalt.err (!%p185_p10)
}
  0x47   :  { %s214_s18 = smov 128   ;;  %s215_s19 = smov 8  }
  0x48   :  { %87 = dma.vmem_to_hbm [thread:$0]  %s82_s1, 2048, %s276_s2, [#allocation7], %s214_s18, %s214_s18, %s215_s19  }
  0x49   :  { %201 = dma.done.wait [#allocation7], 2048  }
  0x4a   :  { %202 = vsyncadd [#allocation7], 4294965248 }
  0x4b   :  { %91 = vsyncpa [#allocation7], 1 }
  0x4c   :  { %92 = vsyncmov [#allocation3] }
  0x4f   :  { %s93_s22 = vpop.sfrf %92 }
  0x50   :  { %p112_p11 = scmp.ne.s32.totalorder %s93_s22, 0 }
  0x52   :  { %97 = shalt.err (%p112_p11)  }

</bundles_post_ra>
